<compile_context>
chip_gen: v7x
topology: tpu7x:2x2x1
jax: 0.10.0
libtpu: 0.0.40
codegen_flags: <defaults>
</compile_context>

<pallas_src>
import functools

import jax
import jax.numpy as jnp
from jax import lax
from jax.experimental import pallas as pl
from jax.experimental.pallas import tpu as pltpu


def _ls_ce_kernel(logits_ref, targets_ref, weight_ref, out_ref, *, off: float, dlt: float):
    x = logits_ref[...]                               # (TN, C), native dtype (f32 / bf16)
    t = targets_ref[...]                              # (TN, 1) int32
    w = weight_ref[...]                               # (1, C)  f32

    tn, c = x.shape

    # Row max in native dtype (exact for bf16); upcast only inside the fused subtract so no
    # standalone f32 copy of the whole tile is held live.
    m = jnp.max(x, axis=1, keepdims=True)                             # (TN, 1)
    z = x.astype(jnp.float32) - m.astype(jnp.float32)                 # (TN, C) f32
    lse = jnp.log(jnp.sum(jnp.exp(z), axis=1, keepdims=True))         # (TN, 1)

    # Folded smoothing distribution: d_c = off + dlt*[c == target]; with wd = w*d:
    #   per_row = sum_c(-d_c * w_c * (z_c - lse)) = lse*sum_c(wd) - sum_c(wd*z)
    col = lax.broadcasted_iota(jnp.int32, (tn, c), 1)
    wd = jnp.where(col == t, w * (off + dlt), w * off)                # (TN, C)
    a = jnp.sum(wd, axis=1, keepdims=True)                            # (TN, 1)
    b = jnp.sum(wd * z, axis=1, keepdims=True)                        # (TN, 1)
    per_row = lse * a - b

    # Ignored rows AND padded / ragged-tail rows (padded target == -100) are dropped with a
    # SELECT (not a multiply) so garbage logits in the ragged last block never propagate.
    valid = t != -100
    per_row = jnp.where(valid, per_row, 0.0)

    tile_sum = jnp.sum(per_row)
    tile_cnt = jnp.sum(valid.astype(jnp.float32))

    # Single packed, lane-dense partial-output block: sublane 0 carries the partial sum,
    # the remaining sublanes carry the valid-row count (wrapper reads [0,0] and [1,0]).
    row = lax.broadcasted_iota(jnp.int32, out_ref.shape, 0)
    out_ref[...] = jnp.where(row == 0, tile_sum, tile_cnt)


def _physical_vmem_bytes():
    try:
        return int(pltpu.get_tpu_info().vmem_capacity_bytes)
    except Exception:
        return 64 << 20          # conservative (v7x-sized) fallback


def _device_kind():
    try:
        return jax.devices()[0].device_kind.lower()
    except Exception:
        return ""


def _choose_tile_n(n, c, itemsize, vmem_budget):
    """Row-tile size from (a) an ~8 MiB/step streaming budget and (b) the VMEM budget."""
    granule = 16 if itemsize == 2 else 8
    # (a) stream ~8 MiB of logits per grid step to amortize the ~0.35 us/step overhead.
    rows_stream = (8 << 20) // max(1, itemsize * c)
    # (b) per-row working set: double-buffered input block + ~3 full-width f32 temporaries.
    per_row_bytes = 2 * itemsize * c + 3 * 4 * c
    rows_vmem = vmem_budget // max(1, per_row_bytes)
    t = max(granule, min(4096, rows_stream, rows_vmem))
    # Don't overshoot the problem size.
    n_ceil = -(-n // granule) * granule
    t = min(t, n_ceil)
    # Leave >= 2 grid steps when possible (lets v7x shard the parallel axis over both TCs;
    # one extra ~0.35 us step is negligible on single-TC chips).
    if n_ceil >= 2 * granule:
        half = -(-(n_ceil // 2) // granule) * granule
        t = min(t, max(granule, half))
    t = max(granule, (t // granule) * granule)
    return int(t)


def _logits_spec(tile_n, c):
    idx = lambda i: (i, 0)
    kind = _device_kind()
    # v5e: lowest HBM bandwidth, plentiful VMEM -> ask for 3-deep buffering on the big input.
    if ("v5e" in kind or "v5 lite" in kind or "v5lite" in kind) and hasattr(pl, "Buffered"):
        try:
            return pl.BlockSpec((tile_n, c), idx, pipeline_mode=pl.Buffered(3))
        except TypeError:
            pass
    return pl.BlockSpec((tile_n, c), idx)


def label_smooth_cross_entropy(logits, targets, weight=None, alpha=0.0,
                               tile_n=None, force_pallas=False):
    """logits: (N, C) float (f32 or bf16); targets: (N,) int, -100 = ignore."""
    n, c = logits.shape
    confidence = 1.0 - float(alpha)
    off = float(alpha) / (c - 1) if c > 1 else 0.0
    dlt = confidence - off

    if weight is None:
        w = jnp.ones((1, c), jnp.float32)
    else:
        w = jnp.asarray(weight, jnp.float32).reshape(1, c)
        w = w / jnp.sum(w)

    # Tiny class counts leave the 128-wide lane dim ~6% utilized; plain XLA wins there.
    if c < 128 and not force_pallas and tile_n is None:
        lp = jax.nn.log_softmax(logits.astype(jnp.float32), axis=1)
        d = jnp.where(jnp.arange(c)[None, :] == targets[:, None], off + dlt, off)
        per_row = jnp.sum(-d * lp * w, axis=1)
        valid = targets != -100
        per_row = jnp.where(valid, per_row, 0.0)
        return jnp.sum(per_row) / jnp.sum(valid.astype(jnp.float32))

    itemsize = jnp.dtype(logits.dtype).itemsize
    vmem_budget = (_physical_vmem_bytes() * 3) // 4        # 48 MiB on v7x, 96 MiB on v5e/v6e
    vmem_budget = min(max(vmem_budget, 32 << 20), 96 << 20)
    if tile_n is None:
        tile_n = _choose_tile_n(n, c, itemsize, vmem_budget)
    grid_n = int(pl.cdiv(n, tile_n))

    # Pad ONLY the tiny targets array; padded rows (-100) mask out the ragged last logits
    # block in-kernel, so the big logits array is streamed untouched in its HBM dtype.
    n_pad = grid_n * tile_n - n
    t32 = targets.astype(jnp.int32)
    if n_pad:
        t32 = jnp.concatenate([t32, jnp.full((n_pad,), -100, jnp.int32)], axis=0)
    targets2d = t32.reshape(grid_n * tile_n, 1)

    kernel = functools.partial(_ls_ce_kernel, off=off, dlt=dlt)

    out = pl.pallas_call(
        kernel,
        out_shape=jax.ShapeDtypeStruct((grid_n * 8, 128), jnp.float32),
        grid_spec=pltpu.PrefetchScalarGridSpec(
            num_scalar_prefetch=0,
            grid=(grid_n,),
            in_specs=[
                _logits_spec(tile_n, c),                       # logits row tile
                pl.BlockSpec((tile_n, 1), lambda i: (i, 0)),   # targets row tile
                pl.BlockSpec((1, c), lambda i: (0, 0)),        # class weights (resident)
            ],
            out_specs=pl.BlockSpec((8, 128), lambda i: (i, 0)),
        ),
        compiler_params=pltpu.CompilerParams(
            dimension_semantics=("parallel",),
            vmem_limit_bytes=int(vmem_budget),
        ),
    )(logits, targets2d, w)

    out = out.reshape(grid_n, 8, 128)
    total = jnp.sum(out[:, 0, 0])
    count = jnp.sum(out[:, 1, 0])
    return total / count      # mean over valid rows (NaN if all rows ignored, like torch)


def _reference(logits, targets, weight, alpha):
    # Pure-JAX reference mirroring the PyTorch forward.
    c = logits.shape[1]
    confidence = 1.0 - alpha
    valid = targets != -100
    logp = jax.nn.log_softmax(logits.astype(jnp.float32), axis=1)
    onehot = jax.nn.one_hot(targets, c, dtype=jnp.float32)
    true_dist = onehot * confidence + (1.0 - onehot) * (alpha / (c - 1))
    if weight is None:
        w = jnp.ones((c,), jnp.float32)
    else:
        w = jnp.asarray(weight, jnp.float32)
        w = w / jnp.sum(w)
    per_row = jnp.sum(-true_dist * logp * w[None, :], axis=1)
    per_row = jnp.where(valid, per_row, 0.0)
    return jnp.sum(per_row) / jnp.sum(valid.astype(jnp.float32))


if __name__ == "__main__":
    key = jax.random.PRNGKey(0)
    k1, k2, k3, k4, k5, k6 = jax.random.split(key, 6)
    alpha = 0.1

    # ---- Test 1: tiny C=8 forced through the Pallas kernel (f32, per-class weights) ----
    N, C = 64, 8
    logits = jax.random.normal(k1, (N, C), jnp.float32)
    targets = jax.random.randint(k2, (N,), 0, C, jnp.int32)
    targets = jnp.where(jax.random.bernoulli(k3, 0.25, (N,)), -100, targets)
    weight = jnp.arange(1, C + 1, dtype=jnp.float32)

    loss = jax.block_until_ready(
        label_smooth_cross_entropy(logits, targets, weight=weight, alpha=alpha,
                                   force_pallas=True))
    ref = _reference(logits, targets, weight, alpha)
    assert jnp.allclose(loss, ref, rtol=1e-4, atol=1e-4), (loss, ref)

    # ---- Test 2: small-C XLA fallback path + weight=None Pallas path ----
    loss_fb = jax.block_until_ready(
        label_smooth_cross_entropy(logits, targets, weight=weight, alpha=alpha))
    assert jnp.allclose(loss_fb, ref, rtol=1e-4, atol=1e-4), (loss_fb, ref)
    loss_nw = jax.block_until_ready(
        label_smooth_cross_entropy(logits, targets, weight=None, alpha=alpha,
                                   force_pallas=True))
    ref_nw = _reference(logits, targets, None, alpha)
    assert jnp.allclose(loss_nw, ref_nw, rtol=1e-4, atol=1e-4), (loss_nw, ref_nw)

    # ---- Test 3: ragged N with explicit tile (partial last block masked in-kernel) ----
    N2 = 100
    logits2 = jax.random.normal(k4, (N2, C), jnp.float32)
    targets2 = jax.random.randint(k5, (N2,), 0, C, jnp.int32)
    targets2 = jnp.where(jax.random.bernoulli(k3, 0.2, (N2,)), -100, targets2)
    loss2 = jax.block_until_ready(
        label_smooth_cross_entropy(logits2, targets2, weight=weight, alpha=alpha,
                                   tile_n=32))
    ref2 = _reference(logits2, targets2, weight, alpha)
    assert jnp.allclose(loss2, ref2, rtol=1e-4, atol=1e-4), (loss2, ref2)

    # ---- Test 4: bf16 logits kept in bf16 in HBM, C=128, auto tiling (Pallas path) ----
    N3, C3 = 256, 128
    logits3 = jax.random.normal(k4, (N3, C3), jnp.float32).astype(jnp.bfloat16)
    targets3 = jax.random.randint(k5, (N3,), 0, C3, jnp.int32)
    loss3 = jax.block_until_ready(
        label_smooth_cross_entropy(logits3, targets3, weight=None, alpha=alpha))
    ref3 = _reference(logits3, targets3, None, alpha)
    assert jnp.allclose(loss3, ref3, rtol=1e-4, atol=1e-4), (loss3, ref3)

    # ---- Test 5: larger C, ragged N, f32, per-class weights, auto tiling ----
    N4, C4 = 200, 512
    logits4 = jax.random.normal(k6, (N4, C4), jnp.float32)
    targets4 = jax.random.randint(k2, (N4,), 0, C4, jnp.int32)
    targets4 = jnp.where(jax.random.bernoulli(k3, 0.3, (N4,)), -100, targets4)
    weight4 = jax.random.uniform(k1, (C4,), jnp.float32, minval=0.5, maxval=1.5)
    loss4 = jax.block_until_ready(
        label_smooth_cross_entropy(logits4, targets4, weight=weight4, alpha=alpha))
    ref4 = _reference(logits4, targets4, weight4, alpha)
    assert jnp.allclose(loss4, ref4, rtol=1e-4, atol=1e-4), (loss4, ref4)

    print("KERNEL_OK")
</pallas_src>

<mosaic_0001>
module attributes {stable_mosaic.version = 11 : i64} {
  func.func @_ls_ce_kernel(%arg0: i32, %arg1: memref<32x8xf32, #tpu.memory_space<vmem>>, %arg2: memref<32x1xi32, #tpu.memory_space<vmem>>, %arg3: memref<1x8xf32, #tpu.memory_space<vmem>>, %arg4: memref<8x128xf32, #tpu.memory_space<vmem>>) attributes {dimension_semantics = [#tpu.dimension_semantics<parallel>], iteration_bounds = array<i64: 2>, scalar_prefetch = 0 : i64, scratch_operands = 0 : i64, tpu.core_type = #tpu.core_type<tc>, window_params = [{transform_indices = @transform_0, window_bounds = array<i64: 32, 8>}, {transform_indices = @transform_1, window_bounds = array<i64: 32, 1>}, {pipeline_mode = #tpu.pipeline_mode<synchronous>, transform_indices = @transform_2, window_bounds = array<i64: 1, 8>}, {transform_indices = @transform_3, window_bounds = array<i64: 8, 128>}]} {
    %c0 = arith.constant 0 : index
    %c0_0 = arith.constant 0 : index
    %0 = vector.load %arg1[%c0, %c0_0] : memref<32x8xf32, #tpu.memory_space<vmem>>, vector<32x8xf32>
    %c0_1 = arith.constant 0 : index
    %c0_2 = arith.constant 0 : index
    %1 = vector.load %arg2[%c0_1, %c0_2] : memref<32x1xi32, #tpu.memory_space<vmem>>, vector<32x1xi32>
    %c0_3 = arith.constant 0 : index
    %c0_4 = arith.constant 0 : index
    %2 = vector.load %arg3[%c0_3, %c0_4] : memref<1x8xf32, #tpu.memory_space<vmem>>, vector<1x8xf32>
    %cst = arith.constant dense<0xFF800000> : vector<32xf32>
    %3 = vector.multi_reduction <maximumf>, %0, %cst [1] : vector<32x8xf32> to vector<32xf32>
    %4 = vector.shape_cast %3 : vector<32xf32> to vector<32x1xf32>
    %5 = vector.broadcast %4 : vector<32x1xf32> to vector<32x8xf32>
    %6 = arith.subf %0, %5 : vector<32x8xf32>
    %7 = math.exp %6 : vector<32x8xf32>
    %cst_5 = arith.constant dense<0.000000e+00> : vector<32xf32>
    %8 = vector.multi_reduction <add>, %7, %cst_5 [1] : vector<32x8xf32> to vector<32xf32>
    %9 = vector.shape_cast %8 : vector<32xf32> to vector<32x1xf32>
    %10 = math.log %9 : vector<32x1xf32>
    %11 = tpu.iota {dimensions = array<i32: 1>} : vector<32x8xi32>
    %12 = vector.broadcast %1 : vector<32x1xi32> to vector<32x8xi32>
    %13 = arith.cmpi eq, %11, %12 : vector<32x8xi32>
    %cst_6 = arith.constant 0.899999976 : f32
    %14 = vector.broadcast %cst_6 : f32 to vector<1x8xf32>
    %15 = arith.mulf %2, %14 : vector<1x8xf32>
    %cst_7 = arith.constant 0.0142857144 : f32
    %16 = vector.broadcast %cst_7 : f32 to vector<1x8xf32>
    %17 = arith.mulf %2, %16 : vector<1x8xf32>
    %18 = vector.shape_cast %15 : vector<1x8xf32> to vector<1x8xf32>
    %19 = vector.broadcast %18 : vector<1x8xf32> to vector<32x8xf32>
    %20 = vector.shape_cast %17 : vector<1x8xf32> to vector<1x8xf32>
    %21 = vector.broadcast %20 : vector<1x8xf32> to vector<32x8xf32>
    %22 = arith.select %13, %19, %21 : vector<32x8xi1>, vector<32x8xf32>
    %cst_8 = arith.constant dense<0.000000e+00> : vector<32xf32>
    %23 = vector.multi_reduction <add>, %22, %cst_8 [1] : vector<32x8xf32> to vector<32xf32>
    %24 = vector.shape_cast %23 : vector<32xf32> to vector<32x1xf32>
    %25 = arith.mulf %22, %6 : vector<32x8xf32>
    %cst_9 = arith.constant dense<0.000000e+00> : vector<32xf32>
    %26 = vector.multi_reduction <add>, %25, %cst_9 [1] : vector<32x8xf32> to vector<32xf32>
    %27 = vector.shape_cast %26 : vector<32xf32> to vector<32x1xf32>
    %28 = arith.mulf %10, %24 : vector<32x1xf32>
    %29 = arith.subf %28, %27 : vector<32x1xf32>
    %c-100_i32 = arith.constant -100 : i32
    %30 = vector.broadcast %c-100_i32 : i32 to vector<32x1xi32>
    %31 = arith.cmpi ne, %1, %30 : vector<32x1xi32>
    %cst_10 = arith.constant 0.000000e+00 : f32
    %32 = vector.broadcast %cst_10 : f32 to vector<32x1xf32>
    %33 = arith.select %31, %29, %32 : vector<32x1xi1>, vector<32x1xf32>
    %34 = vector.shape_cast %33 : vector<32x1xf32> to vector<1x32x1xf32>
    %cst_11 = arith.constant dense<0.000000e+00> : vector<1xf32>
    %35 = vector.multi_reduction <add>, %34, %cst_11 [1, 2] : vector<1x32x1xf32> to vector<1xf32>
    %36 = vector.shape_cast %35 : vector<1xf32> to vector<1x1x1xf32>
    %37 = vector.extract %36[0, 0, 0] : f32 from vector<1x1x1xf32>
    %38 = arith.extui %31 : vector<32x1xi1> to vector<32x1xi32>
    %39 = arith.sitofp %38 : vector<32x1xi32> to vector<32x1xf32>
    %40 = vector.shape_cast %39 : vector<32x1xf32> to vector<1x32x1xf32>
    %cst_12 = arith.constant dense<0.000000e+00> : vector<1xf32>
    %41 = vector.multi_reduction <add>, %40, %cst_12 [1, 2] : vector<1x32x1xf32> to vector<1xf32>
    %42 = vector.shape_cast %41 : vector<1xf32> to vector<1x1x1xf32>
    %43 = vector.extract %42[0, 0, 0] : f32 from vector<1x1x1xf32>
    %44 = tpu.iota {dimensions = array<i32: 0>} : vector<8x128xi32>
    %c0_i32 = arith.constant 0 : i32
    %45 = vector.broadcast %c0_i32 : i32 to vector<8x128xi32>
    %46 = arith.cmpi eq, %44, %45 : vector<8x128xi32>
    %47 = vector.broadcast %37 : f32 to vector<8x128xf32>
    %48 = vector.broadcast %43 : f32 to vector<8x128xf32>
    %49 = arith.select %46, %47, %48 : vector<8x128xi1>, vector<8x128xf32>
    %c0_13 = arith.constant 0 : index
    %c0_14 = arith.constant 0 : index
    %50 = vector.load %arg4[%c0_13, %c0_14] : memref<8x128xf32, #tpu.memory_space<vmem>>, vector<8x128xf32>
    tpu.vector_store %arg4[%c0_13, %c0_14], %49 {strides = array<i32>} : memref<8x128xf32, #tpu.memory_space<vmem>>, vector<8x128xf32>,
    return
  }
  func.func @transform_0(%arg0: i32) -> (i32, i32) {
    %c0_i32 = arith.constant 0 : i32
    %c0_i32_0 = arith.constant 0 : i32
    return %arg0, %c0_i32 : i32, i32
  }
  func.func @transform_1(%arg0: i32) -> (i32, i32) {
    %c0_i32 = arith.constant 0 : i32
    %c0_i32_0 = arith.constant 0 : i32
    return %arg0, %c0_i32 : i32, i32
  }
  func.func @transform_2(%arg0: i32) -> (i32, i32) {
    %c0_i32 = arith.constant 0 : i32
    %c0_i32_0 = arith.constant 0 : i32
    %c0_i32_1 = arith.constant 0 : i32
    return %c0_i32, %c0_i32_0 : i32, i32
  }
  func.func @transform_3(%arg0: i32) -> (i32, i32) {
    %c0_i32 = arith.constant 0 : i32
    %c0_i32_0 = arith.constant 0 : i32
    return %arg0, %c0_i32 : i32, i32
  }
}

</mosaic_0001>

<bundles_post_ra>
// kernel: tpu_custom_call.1
= control target key start
LH: loop header
LB: loop body
LE: loop exit
PB: predicated region body
PF: predicated region fallthrough
CT: control target
= control target key end

     0   :  { %8 = vsyncpa [#allocation3], 0  ;;  %s792_s0 = inlined_call_operand.vmem [shape: f32[64,8], index: 0, kind: input, shape index: {}]   ;;  %s793_s1 = inlined_call_operand.vmem [shape: s32[64,1], index: 1, kind: input, shape index: {}]   ;;  %s794_s2 = inlined_call_operand.vmem [shape: f32[1,8], index: 2, kind: input, shape index: {}]   ;;  %s795_s3 = inlined_call_operand.hbm [shape: f32[16,128], index: 3, kind: output, shape index: {}]  }
   0x1   :  { %10 = vsyncpa [#allocation3 + $0x1], 0  ;;  %s627_s12 = smov 0   ;;  %s629_s13 = smov 0  }
   0x2   :  { %s631_s14 = smov 0   ;;  %s633_s15 = smov 0  }
   0x3 LB: > { %s648_s16 = sadd.s32 4294967295, %s602_s15   ;;  %s460_s17 = sadd.s32 4294967294, %s602_s15   ;;  %s602_s15 = sphi %s633_s15, %s801_s15   ;;  %s598_s14 = sphi %s631_s14, %s800_s14   ;;  %s594_s13 = sphi %s629_s13, %s799_s13   ;;  %s590_s12 = sphi %s627_s12, %s798_s12  }
   0x4   : > { %s652_s18 = sadd.s32 1, %s602_s15   ;;  %s96_s19 = sadd.s32 1, %s598_s14 }
   0x5   : > { %s93_s20 = ssub.s32 %s602_s15, %s652_s18  ;;  %p106_p0 = scmp.ne.s32.totalorder %s598_s14, %s594_s13 }
   0x6   : > { %p94_p1 = scmp.eq.s32.totalorder %s93_s20, 0  ;;  %p107_p2 = scmp.eq.s32.totalorder %s648_s16, 1 }
   0x7   : > { %p112_p3 = scmp.ne.s32.totalorder %s594_s13, %s590_s12  ;;  %p113_p4 = scmp.eq.s32.totalorder %s460_s17, 1 }
   0x8   : > { %s663_s21 = scalar_select %p94_p1, %s598_s14, %s96_s19  }
   0x9   : > { %p665_p5 = por %p107_p2, %p106_p0  ;;  %p669_p6 = por %p113_p4, %p112_p3 }
   0xa   : > { %p463_p7 = scmp.ge.s32.totalorder %s602_s15, 1  ;;  %p152_p8 = scmp.lt.s32.totalorder %s602_s15, 3 }
   0xc   : > { %p153_p9 = pnand %p463_p7, %p152_p8 }
   0xd   : > { %s465_s24 = sshll.u32 (!%p153_p9), %s648_s16, 2  ;;  %v604_v0 = vmov (!%p153_p9), 0   ;;  %vm202_vm0 = vcmask (!%p153_p9), 64512   ;;  %v247_v20 = vlaneseq (!%p153_p9)  ;;  %v201_v26 = vld [vmem:[%s794_s2] sm:$0x1] (!%p153_p9)  ;;  %vm327_vm7 = vcmask (!%p153_p9), 7168  }
   0xe   : > { %156 = sbr.rel (%p153_p9) target bundleno = 581 (0x245), region = 32  ;;  %p182_p10 = scmp.lt.s32.totalorder (!%p153_p9), %s465_s24, 7  ;;  %523 = vset.pattern.permute.xlu1 (!%p153_p9), %v604_v0  ;;  %522 = vset.pattern.permute.xlu0 (!%p153_p9), %v604_v0  ;;  %v265_v29 = vmul.f32 (!%p153_p9), 0.9, %v201_v26  ;;  %v266_v30 = vmul.f32 (!%p153_p9), 0.014285714, %v201_v26 }
   0xf   : > { %v698_v25 = vshrl.u32 (!%p153_p9), %v247_v20, 7  ;;  %v248_v33 = vand.u32 (!%p153_p9), 127, %v247_v20  ;;  %v605_v62 = vmov (!%p153_p9), 0.0   ;;  %s178_s7 = sand.u32 (!%p153_p9), 1, %s594_s13   ;;  %s474_s9 = sshll.u32 (!%p153_p9), %s648_s16, 7 }
  0x10   : > { %s464_s8 = sshll.u32 (!%p153_p9), %s178_s7, 3  ;;  %s376_s16 = scalar_lea.sflag (!%p153_p9), [#allocation3], %s178_s7 }
  0x11   : > { %v270_v31 = vsub.s32 (!%p153_p9), 0, %v698_v25  ;;  %s180_s10 = scalar_lea.vmem (!%p153_p9), [#allocation2], %s464_s8  ;;  %vm370_vm10 = vcmp.eq.s32.totalorder (!%p153_p9), %v698_v25, 0  ;;  %s606_s27 = smov (!%p153_p9), [#allocation2]  }
  0x12   : > { %s389_s11 = sshll.u32 (!%p153_p9), %s180_s10, 4  ;;  %s752_s11 = int_to_ptr.vmem [resolvable:$true] %s389_s11 }
  0x13   : > { %v271_v35 = vrot.slane (!%p153_p9), %v265_v29, %v270_v31  ;;  %v277_v36 = vrot.slane (!%p153_p9), %v266_v30, %v270_v31  ;;  %s540_s26 = scalar_lea.vmem (!%p153_p9), %s752_s11, 128 }
  0x14   : > { %p541_p11 = scmp.ne.s32.totalorder (!%p153_p9), %s752_s11, %s540_s26 }
  0x15   : > { %s803_s24 = smov (!%p182_p10, %s465_s24), 7 }
  0x16   : > { %s466_s25 = sshll.u32 %s803_s24, 3  ;;  %p542_p12 = pnand %p541_p11, %p665_p5 }
  0x17   : > { %s185_s28 = scalar_lea.vmem %s792_s0, %s466_s25  ;;  %s191_s4 = scalar_lea.vmem %s793_s1, %s466_s25 }
  0x18   : > { %v195_v1 = vld [vmem:[%s185_s28 + $0x10] sm:$0xff]  ;;  %v193_v2 = vld [vmem:[%s185_s28] sm:$0xff]  ;;  %v196_v3 = vld [vmem:[%s185_s28 + $0x18] sm:$0xff]  ;;  %s750_s25 = scalar_lea.hbm %s795_s3, %s474_s9  ;;  %p543_p13 = pneg %p542_p12 }
  0x19   : > { %v209_v4 = vsel %vm202_vm0, %v195_v1, -inf  ;;  %v203_v5 = vsel %vm202_vm0, %v193_v2, -inf  ;;  %v194_v6 = vld [vmem:[%s185_s28 + $0x8] sm:$0xff]  ;;  %v212_v7 = vsel %vm202_vm0, %v196_v3, -inf  ;;  %v689_v10 = vld [vmem:[%s191_s4 + $0x10] sm:$0xff]  ;;  %v691_v11 = vld [vmem:[%s191_s4] sm:$0xff] }
  0x1a   : > { %210 = vmax.xlane.f32.xlu1 %v209_v4  ;;  %204 = vmax.xlane.f32.xlu0 %v203_v5  ;;  %v206_v8 = vsel %vm202_vm0, %v194_v6, -inf  ;;  %v686_v9 = vld [vmem:[%s191_s4 + $0x8] sm:$0xff]  ;;  %v695_v12 = vld [vmem:[%s191_s4 + $0x18] sm:$0xff]  ;;  %vm319_vm6 = vcmp.ne.s32.totalorder %v691_v11, 4294967196  ;;  %vm321_vm8 = vcmp.ne.s32.totalorder %v689_v10, 4294967196  ;;  %s544_s28 = sshll.u32 %s606_s27, 4  ;;  %s545_s28 = int_to_ptr.vmem [resolvable:$false] %s544_s28 }
  0x1b   : > { %vm320_vm5 = vcmp.ne.s32.totalorder %v686_v9, 4294967196  ;;  %v469_v0 = vsel %vm319_vm6, 1.0, %v605_v62  ;;  %vm322_vm9 = vcmp.ne.s32.totalorder %v695_v12, 4294967196  ;;  %s546_s29 = scalar_lea.vmem %s545_s28, 256  ;;  %p547_p0 = scmp.lt.s32.totalorder %s752_s11, %s545_s28 }
  0x1c   : > { %v470_v63 = vsel %vm320_vm5, 1.0, %v605_v62  ;;  %p548_p1 = scmp.lt.s32.totalorder %s546_s29, %s540_s26 }
  0x1e   : > { %213 = vmax.xlane.f32.xlu1 %v212_v7  ;;  %207 = vmax.xlane.f32.xlu0 %v206_v8  ;;  %p549_p2 = por %p548_p1, %p547_p0 }
  0x20   : > { %p550_p3 = pnand %p549_p2, %p543_p13 }
  0x2f   : > { %253 = vperm.xlu1 %523, %v686_v9  }
  0x33   : > { %256 = vperm.xlu1 %523, %v689_v10  }
  0x34   : > { %250 = vperm.xlu0 %522, %v691_v11  }
  0x37   : > { %259 = vperm.xlu1 %523, %v695_v12  }
  0xa7   : > { %v211_v13 = vpop.xlane.xlu1 %210  ;;  %v205_v14 = vpop.xlane.xlu0 %204 }
  0xa8   : > { %v217_v15 = vsub.f32 %v195_v1, %v211_v13  ;;  %v215_v16 = vsub.f32 %v193_v2, %v205_v14  ;;  %v353_v1 = vsel %vm327_vm7, %v470_v63, 0.0  ;;  %v352_v2 = vsel %vm327_vm7, %v469_v0, 0.0 }
  0xa9   : > { %v354_v4 = vadd.f32 %v353_v1, %v352_v2 }
  0xaa   : > { %v219_v17 = vmul.f32 1.442695, %v215_v16  ;;  %v223_v21 = vmul.f32 1.442695, %v217_v15 }
  0xab   : > { %v214_v18 = vpop.xlane.xlu1 %213  ;;  %v208_v19 = vpop.xlane.xlu0 %207 }
  0xac   : > { %v216_v22 = vsub.f32 %v194_v6, %v208_v19  ;;  %524 = vpow2.f32 %v219_v17  ;;  %v218_v23 = vsub.f32 %v196_v3, %v214_v18  ;;  %v471_v3 = vsel %vm321_vm8, 1.0, %v605_v62 }
  0xad   : > { %526 = vpow2.f32 %v223_v21  ;;  %v355_v5 = vsel %vm327_vm7, %v471_v3, 0.0  ;;  %v472_v6 = vsel %vm322_vm9, 1.0, %v605_v62 }
  0xae   : > { %v221_v24 = vmul.f32 1.442695, %v216_v22  ;;  %v225_v27 = vmul.f32 1.442695, %v218_v23  ;;  %v356_v7 = vadd.f32 %v355_v5, %v354_v4  ;;  %v357_v8 = vsel %vm327_vm7, %v472_v6, 0.0 }
  0xaf   : > { %v254_v28 = vpop.permute.xlu1 %253 }
  0xb0   : > { %528 = vpow2.f32 %v221_v24  ;;  %vm262_vm2 = vcmp.eq.s32.totalorder %v248_v33, %v254_v28  ;;  %v358_v13 = vadd.f32 %v357_v8, %v356_v7 }
  0xb1   : > { %530 = vpow2.f32 %v225_v27  ;;  %v280_v44 = vsel %vm262_vm2, %v271_v35, %v277_v36 }
  0xb2   : > { %v296_v49 = vmul.f32 %v280_v44, %v216_v22  ;;  %v286_v55 = vsel %vm202_vm0, %v280_v44, 0.0 }
  0xb3   : > { %v251_v32 = vpop.permute.xlu0 %250  ;;  %v257_v37 = vpop.permute.xlu1 %256 }
  0xb4   : > { %vm261_vm1 = vcmp.eq.s32.totalorder %v248_v33, %v251_v32  ;;  %vm263_vm3 = vcmp.eq.s32.totalorder %v248_v33, %v257_v37  ;;  %v302_v51 = vsel %vm202_vm0, %v296_v49, 0.0 }
  0xb5   : > { %v279_v39 = vsel %vm261_vm1, %v271_v35, %v277_v36  ;;  %v281_v45 = vsel %vm263_vm3, %v271_v35, %v277_v36 }
  0xb6   : > { %v525_v34 = vpop.eup %524  ;;  %v283_v41 = vsel %vm202_vm0, %v279_v39, 0.0  ;;  %v289_v46 = vsel %vm202_vm0, %v281_v45, 0.0  ;;  %v297_v52 = vmul.f32 %v281_v45, %v217_v15  ;;  %v295_v56 = vmul.f32 %v279_v39, %v215_v16 }
  0xb7   : > { %v227_v38 = vsel %vm202_vm0, %v525_v34, 0.0  ;;  %v527_v40 = vpop.eup %526  ;;  %v260_v53 = vpop.permute.xlu1 %259 }
  0xb8   : > { %228 = vadd.xlane.f32.xlu1 %v227_v38  ;;  %v233_v47 = vsel %vm202_vm0, %v527_v40, 0.0  ;;  %v305_v54 = vsel %vm202_vm0, %v297_v52, 0.0  ;;  %vm264_vm4 = vcmp.eq.s32.totalorder %v248_v33, %v260_v53  ;;  %v299_v57 = vsel %vm202_vm0, %v295_v56, 0.0 }
  0xb9   : > { %v282_v58 = vsel %vm264_vm4, %v271_v35, %v277_v36 }
  0xba   : > { %v529_v42 = vpop.eup %528  ;;  %v292_v59 = vsel %vm202_vm0, %v282_v58, 0.0  ;;  %v298_v60 = vmul.f32 %v282_v58, %v218_v23 }
  0xbb   : > { %v230_v43 = vsel %vm202_vm0, %v529_v42, 0.0  ;;  %v531_v48 = vpop.eup %530 }
  0xbc   : > { %231 = vadd.xlane.f32.xlu0 %v230_v43  ;;  %284 = vadd.xlane.f32.xlu1 %v283_v41  ;;  %v236_v50 = vsel %vm202_vm0, %v531_v48, 0.0  ;;  %v308_v61 = vsel %vm202_vm0, %v298_v60, 0.0 }
  0xc0   : > { %290 = vadd.xlane.f32.xlu0 %v289_v46  ;;  %234 = vadd.xlane.f32.xlu1 %v233_v47 }
  0xc4   : > { %303 = vadd.xlane.f32.xlu0 %v302_v51  ;;  %237 = vadd.xlane.f32.xlu1 %v236_v50 }
  0xc8   : > { %306 = vadd.xlane.f32.xlu0 %v305_v54  ;;  %287 = vadd.xlane.f32.xlu1 %v286_v55 }
  0xcc   : > { %300 = vadd.xlane.f32.xlu1 %v299_v57 }
  0xd0   : > { %293 = vadd.xlane.f32.xlu1 %v292_v59 }
  0xd4   : > { %309 = vadd.xlane.f32.xlu1 %v308_v61 }
  0xd8   : > { %359 = vadd.xlane.f32.xlu1 %v358_v13 }
 0x145   : > { %v229_v14 = vpop.xlane.xlu1 %228 }
 0x146   : > { %532 = vlog2.f32 %v229_v14 }
 0x149   : > { %v285_v15 = vpop.xlane.xlu1 %284  ;;  %v232_v16 = vpop.xlane.xlu0 %231 }
 0x14a   : > { %534 = vlog2.f32 %v232_v16 }
 0x14d   : > { %v235_v17 = vpop.xlane.xlu1 %234  ;;  %v291_v18 = vpop.xlane.xlu0 %290 }
 0x14e   : > { %536 = vlog2.f32 %v235_v17 }
 0x150   : > { %v533_v19 = vpop.eup %532 }
 0x151   : > { %v238_v20 = vpop.xlane.xlu1 %237  ;;  %v240_v22 = vmul.f32 0.6931472, %v533_v19  ;;  %v304_v26 = vpop.xlane.xlu0 %303 }
 0x152   : > { %538 = vlog2.f32 %v238_v20 }
 0x153   : > { %v311_v29 = vmul.f32 %v285_v15, %v240_v22 }
 0x154   : > { %v535_v21 = vpop.eup %534 }
 0x155   : > { %v288_v23 = vpop.xlane.xlu1 %287  ;;  %v242_v24 = vmul.f32 0.6931472, %v535_v21  ;;  %v307_v37 = vpop.xlane.xlu0 %306 }
 0x157   : > { %v312_v27 = vmul.f32 %v288_v23, %v242_v24 }
 0x158   : > { %v537_v28 = vpop.eup %536 }
 0x159   : > { %v244_v30 = vmul.f32 0.6931472, %v537_v28  ;;  %v316_v31 = vsub.f32 %v312_v27, %v304_v26  ;;  %v301_v32 = vpop.xlane.xlu1 %300 }
 0x15a   : > { %v315_v33 = vsub.f32 %v311_v29, %v301_v32 }
 0x15b   : > { %v313_v34 = vmul.f32 %v291_v18, %v244_v30  ;;  %v324_v35 = vsel %vm320_vm5, %v316_v31, 0.0 }
 0x15c   : > { %v539_v36 = vpop.eup %538  ;;  %v323_v38 = vsel %vm319_vm6, %v315_v33, 0.0  ;;  %v329_v41 = vsel %vm327_vm7, %v324_v35, 0.0 }
 0x15d   : > { %v317_v39 = vsub.f32 %v313_v34, %v307_v37  ;;  %v328_v40 = vsel %vm327_vm7, %v323_v38, 0.0  ;;  %v246_v42 = vmul.f32 0.6931472, %v539_v36  ;;  %v294_v43 = vpop.xlane.xlu1 %293 }
 0x15e   : > { %v330_v46 = vadd.f32 %v329_v41, %v328_v40 }
 0x15f   : > { %v325_v44 = vsel %vm321_vm8, %v317_v39, 0.0  ;;  %v314_v45 = vmul.f32 %v294_v43, %v246_v42 }
 0x160   : > { %v331_v9 = vsel %vm327_vm7, %v325_v44, 0.0 }
 0x161   : > { %v310_v47 = vpop.xlane.xlu1 %309  ;;  %v332_v49 = vadd.f32 %v331_v9, %v330_v46 }
 0x162   : > { %v318_v48 = vsub.f32 %v314_v45, %v310_v47 }
 0x164   : > { %v326_v11 = vsel %vm322_vm9, %v318_v48, 0.0 }
 0x165   : > { %v333_v50 = vsel %vm327_vm7, %v326_v11, 0.0  ;;  %v360_v52 = vpop.xlane.xlu1 %359 }
 0x166   : > { %v334_v51 = vadd.f32 %v333_v50, %v332_v49  ;;  %v361_v53 = vrot.slane %v360_v52, 4 }
 0x168   : > { %335 = vadd.xlane.f32.xlu0 %v334_v51  ;;  %v362_v54 = vadd.f32 %v361_v53, %v360_v52 }
 0x16a   : > { %v363_v10 = vrot.slane %v362_v54, 2 }
 0x16c   : > { %v364_v58 = vadd.f32 %v363_v10, %v362_v54 }
 0x16e   : > { %v365_v61 = vrot.slane %v364_v58, 1 }
 0x170   : > { %v366_v63 = vadd.f32 %v365_v61, %v364_v58 }
 0x1f5   : > { %v336_v55 = vpop.xlane.xlu0 %335 }
 0x1f6   : > { %v337_v56 = vrot.slane %v336_v55, 4 }
 0x1f8   : > { %v338_v57 = vadd.f32 %v337_v56, %v336_v55 }
 0x1fa   : > { %v339_v59 = vrot.slane %v338_v57, 2 }
 0x1fc   : > { %v340_v60 = vadd.f32 %v339_v59, %v338_v57 }
 0x1fe   : > { %v341_v12 = vrot.slane %v340_v60, 1 }
 0x200   : > { %v342_v62 = vadd.f32 %v341_v12, %v340_v60 }
 0x202   : > { %477 = vpush %v342_v62 }
 0x203   : > { %479 = vpush %v366_v63 }
 0x233   : > { %s478_s17 = spop %477 }
 0x234   : > { %v371_v0 = vstv %s478_s17  ;;  %s480_s19 = spop %479 }
 0x235   : > { %v372_v1 = vstv %s480_s19 }
 0x236   : > { %v373_v2 = vsel %vm370_vm10, %v371_v0, %v372_v1 }
 0x237   : > { %374 = vst [vmem:[%s180_s10] sm:$0xff] %v373_v2 }
 0x238   : > { %553 = shalt.err (!%p550_p3)
}
 0x239   : > { %s554_s30 = scalar_lea.hbm %s750_s25, 128  ;;  %s558_s6 = scalar_lea.hbm %s795_s3, 256 }
 0x23a   : > { %p555_p4 = scmp.ne.s32.totalorder %s750_s25, %s554_s30  ;;  %p559_p9 = scmp.lt.u32.totalorder %s750_s25, %s795_s3 }
 0x23b   : > { %p560_p10 = scmp.lt.u32.totalorder %s558_s6, %s554_s30  ;;  %p562_p12 = scmp.lt.u32.totalorder %s554_s30, %s750_s25 }
 0x23c   : > { %p556_p7 = pnand %p555_p4, %p665_p5 }
 0x23d   : > { %p561_p11 = por %p560_p10, %p559_p9 }
 0x23e   : > { %p557_p8 = pneg %p556_p7 }
 0x23f   : > { %p563_p13 = por %p562_p12, %p561_p11 }
 0x241   : > { %p564_p0 = pnand %p563_p13, %p557_p8 }
 0x243   : > { %567 = shalt.err (!%p564_p0)
}
 0x244   : > { %481 = dma.vmem_to_hbm [thread:$0]  (%p665_p5), %s752_s11, 128, %s750_s25, %s376_s16  }
 0x245 PF: > { %p487_p1 = scmp.ge.s32.totalorder %s602_s15, 2  ;;  %s401_s9 = sand.u32 1, %s590_s12  }
 0x246   : > { %s402_s10 = scalar_lea.sflag [#allocation3], %s401_s9 }
 0x247   : > { %p484_p2 = pnand %p487_p1, %p669_p6 }
 0x249   : > { %585 = dma.done.wait (!%p484_p2), %s402_s10, 128  }
 0x24a   : > { %587 = vsyncadd (!%p484_p2), %s402_s10, 4294967168  ;;  %p13_p3 = scmp.ge.s32.totalorder %s652_s18, 4   ;;  %s798_s12 = smov %s594_s13 }
 0x24b   : > { %s799_s13 = smov %s598_s14  ;;  %s800_s14 = smov %s663_s21 }
 0x24c   : > { %s801_s15 = smov %s652_s18  ;;  %15 = sbr.rel (!%p13_p3) target bundleno = 3 (0x3), region = 70 }
 0x253   :  { %407 = vsyncpa [#allocation3], 1 }
 0x254   :  { %409 = vsyncpa [#allocation3 + $0x1], 1 }

</bundles_post_ra>
